<compile_context>
chip_gen: v7x
topology: tpu7x:2x2x1
jax: 0.10.0
libtpu: 0.0.40
codegen_flags: <defaults>
</compile_context>

<pallas_src>
import functools

import jax
import jax.numpy as jnp
from jax.experimental import pallas as pl
from jax.experimental.pallas import tpu as pltpu


def _round_up(a, b):
    return ((a + b - 1) // b) * b


def _label_smoothing_kernel(x_ref, tgt_ref, out_ref, acc_ref, *,
                            confidence, smoothing, n_rows):
    i = pl.program_id(0)

    @pl.when(i == 0)
    def _init():
        acc_ref[0] = jnp.float32(0.0)

    x = x_ref[...].astype(jnp.float32)                     # (TILE_N, C) f32
    tile_n, c = x.shape

    # Row-wise reductions over the lane (class) axis; only exp(x - m) is a
    # full-tile intermediate — no (TILE_N, C) logprobs array is materialized.
    m = jnp.max(x, axis=-1, keepdims=True)                 # (TILE_N, 1)
    s = jnp.sum(jnp.exp(x - m), axis=-1, keepdims=True)    # (TILE_N, 1)
    lse = m + jnp.log(s)                                   # logsumexp per row
    sum_x = jnp.sum(x, axis=-1, keepdims=True)             # (TILE_N, 1)

    # Gather the target logit with a lane-iota compare (VPU/XLU path, no MXU).
    col = jax.lax.broadcasted_iota(jnp.int32, x.shape, 1)  # (TILE_N, C)
    tgt = tgt_ref[...]                                     # (TILE_N, 1) int32
    x_tgt = jnp.sum(jnp.where(col == tgt, x, 0.0), axis=-1, keepdims=True)

    nll_loss = lse - x_tgt                  # -logprobs[target]
    smooth_loss = lse - sum_x * (1.0 / c)   # -mean(logprobs)
    loss = confidence * nll_loss + smoothing * smooth_loss  # (TILE_N, 1)

    # Mask rows that are zero-padding of the ragged last tile.
    row = jax.lax.broadcasted_iota(jnp.int32, (tile_n, 1), 0) + i * tile_n
    loss = jnp.where(row < n_rows, loss, 0.0)

    acc_ref[0] += jnp.sum(loss)

    @pl.when(i == pl.num_programs(0) - 1)
    def _finalize():
        out_ref[0, 0] = acc_ref[0] * jnp.float32(1.0 / n_rows)


def label_smoothing_loss(x, target, smoothing=0.1, tile_n=None):
    """Pallas equivalent of LabelSmoothing(smoothing).forward(x, target).

    x: (N, C) logits (f32 or bf16), target: (N,) int class ids. Returns a
    scalar f32 mean loss.
    """
    n, c = x.shape
    confidence = 1.0 - smoothing

    # Pick a batch tile: ~8 MiB of f32 per input buffer keeps double-buffered
    # tiles comfortably inside scoped VMEM on v5e/v6e/v7x while being large
    # enough to sit near the HBM roofline.
    if tile_n is None:
        tile_n = max(8, min(1024, (8 * 1024 * 1024) // (c * 4)))
    tile_n = max(8, (int(tile_n) // 8) * 8)
    tile_n = min(tile_n, _round_up(n, 8))
    n_pad = _round_up(n, tile_n)
    grid_n = n_pad // tile_n

    tgt2d = target.astype(jnp.int32).reshape(n, 1)
    if n_pad != n:
        x = jnp.pad(x, ((0, n_pad - n), (0, 0)))
        tgt2d = jnp.pad(tgt2d, ((0, n_pad - n), (0, 0)))

    kernel = functools.partial(
        _label_smoothing_kernel,
        confidence=confidence, smoothing=smoothing, n_rows=n,
    )

    out = pl.pallas_call(
        kernel,
        out_shape=jax.ShapeDtypeStruct((1, 1), jnp.float32),
        grid=(grid_n,),
        in_specs=[
            pl.BlockSpec((tile_n, c), lambda i: (i, 0)),   # logits tile (VMEM)
            pl.BlockSpec((tile_n, 1), lambda i: (i, 0)),   # target ids tile
        ],
        out_specs=pl.BlockSpec(memory_space=pltpu.SMEM),   # scalar loss
        scratch_shapes=[pltpu.SMEM((1,), jnp.float32)],    # running f32 sum
        compiler_params=pltpu.CompilerParams(
            # Grid axis carries an accumulator -> must be sequential.
            dimension_semantics=("arbitrary",),
            # Explicit limit so tile sizing stays valid on v7x (64 MiB VMEM).
            vmem_limit_bytes=48 * 1024 * 1024,
        ),
    )(x, tgt2d)
    return out[0, 0]


def _reference(x, target, smoothing=0.1):
    confidence = 1.0 - smoothing
    logprobs = jax.nn.log_softmax(x.astype(jnp.float32), axis=-1)
    nll = -jnp.take_along_axis(logprobs, target[:, None], axis=-1)[:, 0]
    smooth = -jnp.mean(logprobs, axis=-1)
    return jnp.mean(confidence * nll + smoothing * smooth)


if __name__ == "__main__":
    key = jax.random.PRNGKey(0)
    k1, k2, k3, k4 = jax.random.split(key, 4)
    smoothing = 0.1

    # Test 1: small aligned shape, single tile, f32 logits.
    x1 = jax.random.normal(k1, (8, 128), dtype=jnp.float32)
    t1 = jax.random.randint(k2, (8,), 0, 128, dtype=jnp.int32)
    out1 = jax.block_until_ready(label_smoothing_loss(x1, t1, smoothing))
    ref1 = jax.block_until_ready(_reference(x1, t1, smoothing))
    assert jnp.allclose(out1, ref1, atol=1e-5, rtol=1e-5), (out1, ref1)

    # Test 2: ragged batch (N=37), forced small tile -> 3 grid steps with a
    # masked last tile, bf16 logits cast to f32 inside the kernel.
    x2 = jax.random.normal(k3, (37, 256), dtype=jnp.float32).astype(jnp.bfloat16)
    t2 = jax.random.randint(k4, (37,), 0, 256, dtype=jnp.int32)
    out2 = jax.block_until_ready(
        label_smoothing_loss(x2, t2, smoothing, tile_n=16))
    ref2 = jax.block_until_ready(_reference(x2, t2, smoothing))
    assert jnp.allclose(out2, ref2, atol=1e-5, rtol=1e-5), (out2, ref2)

    print("KERNEL_OK")
</pallas_src>

<mosaic_0001>
module attributes {stable_mosaic.version = 11 : i64} {
  func.func @_label_smoothing_kernel(%arg0: i32, %arg1: memref<8x128xf32, #tpu.memory_space<vmem>>, %arg2: memref<8x1xi32, #tpu.memory_space<vmem>>, %arg3: memref<1x1xf32, #tpu.memory_space<smem>>, %arg4: memref<1xf32, #tpu.memory_space<smem>>) attributes {dimension_semantics = [#tpu.dimension_semantics<arbitrary>], iteration_bounds = array<i64: 1>, scalar_prefetch = 0 : i64, scratch_operands = 1 : i64, tpu.core_type = #tpu.core_type<tc>, window_params = [{transform_indices = @transform_0, window_bounds = array<i64: 8, 128>}, {transform_indices = @transform_1, window_bounds = array<i64: 8, 1>}, {transform_indices = @transform_2, window_bounds = array<i64: 1, 1>}]} {
    %c0_i32 = arith.constant 0 : i32
    %0 = arith.cmpi eq, %arg0, %c0_i32 : i32
    %1 = arith.extui %0 : i1 to i32
    %c0_i32_0 = arith.constant 0 : i32
    %2 = arith.cmpi ne, %1, %c0_i32_0 : i32
    scf.if %2 {
      %cst_18 = arith.constant 0.000000e+00 : f32
      %c0_19 = arith.constant 0 : index
      %50 = memref.load %arg4[%c0_19] : memref<1xf32, #tpu.memory_space<smem>>
      memref.store %cst_18, %arg4[%c0_19] : memref<1xf32, #tpu.memory_space<smem>>
    } else {
    }
    %c0 = arith.constant 0 : index
    %c0_1 = arith.constant 0 : index
    %3 = vector.load %arg1[%c0, %c0_1] : memref<8x128xf32, #tpu.memory_space<vmem>>, vector<8x128xf32>
    %cst = arith.constant dense<0xFF800000> : vector<8xf32>
    %4 = vector.multi_reduction <maximumf>, %3, %cst [1] : vector<8x128xf32> to vector<8xf32>
    %5 = vector.shape_cast %4 : vector<8xf32> to vector<8x1xf32>
    %6 = vector.broadcast %5 : vector<8x1xf32> to vector<8x128xf32>
    %7 = arith.subf %3, %6 : vector<8x128xf32>
    %8 = math.exp %7 : vector<8x128xf32>
    %cst_2 = arith.constant dense<0.000000e+00> : vector<8xf32>
    %9 = vector.multi_reduction <add>, %8, %cst_2 [1] : vector<8x128xf32> to vector<8xf32>
    %10 = vector.shape_cast %9 : vector<8xf32> to vector<8x1xf32>
    %11 = math.log %10 : vector<8x1xf32>
    %12 = arith.addf %5, %11 : vector<8x1xf32>
    %cst_3 = arith.constant dense<0.000000e+00> : vector<8xf32>
    %13 = vector.multi_reduction <add>, %3, %cst_3 [1] : vector<8x128xf32> to vector<8xf32>
    %14 = vector.shape_cast %13 : vector<8xf32> to vector<8x1xf32>
    %15 = tpu.iota {dimensions = array<i32: 1>} : vector<8x128xi32>
    %c0_4 = arith.constant 0 : index
    %c0_5 = arith.constant 0 : index
    %16 = vector.load %arg2[%c0_4, %c0_5] : memref<8x1xi32, #tpu.memory_space<vmem>>, vector<8x1xi32>
    %17 = vector.broadcast %16 : vector<8x1xi32> to vector<8x128xi32>
    %18 = arith.cmpi eq, %15, %17 : vector<8x128xi32>
    %cst_6 = arith.constant 0.000000e+00 : f32
    %19 = vector.broadcast %cst_6 : f32 to vector<8x128xf32>
    %20 = arith.select %18, %3, %19 : vector<8x128xi1>, vector<8x128xf32>
    %cst_7 = arith.constant dense<0.000000e+00> : vector<8xf32>
    %21 = vector.multi_reduction <add>, %20, %cst_7 [1] : vector<8x128xf32> to vector<8xf32>
    %22 = vector.shape_cast %21 : vector<8xf32> to vector<8x1xf32>
    %23 = arith.subf %12, %22 : vector<8x1xf32>
    %cst_8 = arith.constant 7.812500e-03 : f32
    %24 = vector.broadcast %cst_8 : f32 to vector<8x1xf32>
    %25 = arith.mulf %14, %24 : vector<8x1xf32>
    %26 = arith.subf %12, %25 : vector<8x1xf32>
    %cst_9 = arith.constant 0.899999976 : f32
    %27 = vector.broadcast %cst_9 : f32 to vector<8x1xf32>
    %28 = arith.mulf %27, %23 : vector<8x1xf32>
    %cst_10 = arith.constant 1.000000e-01 : f32
    %29 = vector.broadcast %cst_10 : f32 to vector<8x1xf32>
    %30 = arith.mulf %29, %26 : vector<8x1xf32>
    %31 = arith.addf %28, %30 : vector<8x1xf32>
    %32 = tpu.iota {dimensions = array<i32: 0>} : vector<8x1xi32>
    %c8_i32 = arith.constant 8 : i32
    %33 = arith.muli %arg0, %c8_i32 : i32
    %34 = vector.broadcast %33 : i32 to vector<8x1xi32>
    %35 = arith.addi %32, %34 : vector<8x1xi32>
    %c8_i32_11 = arith.constant 8 : i32
    %36 = vector.broadcast %c8_i32_11 : i32 to vector<8x1xi32>
    %37 = arith.cmpi slt, %35, %36 : vector<8x1xi32>
    %cst_12 = arith.constant 0.000000e+00 : f32
    %38 = vector.broadcast %cst_12 : f32 to vector<8x1xf32>
    %39 = arith.select %37, %31, %38 : vector<8x1xi1>, vector<8x1xf32>
    %c0_13 = arith.constant 0 : index
    %40 = memref.load %arg4[%c0_13] : memref<1xf32, #tpu.memory_space<smem>>
    %41 = vector.shape_cast %39 : vector<8x1xf32> to vector<1x8x1xf32>
    %cst_14 = arith.constant dense<0.000000e+00> : vector<1xf32>
    %42 = vector.multi_reduction <add>, %41, %cst_14 [1, 2] : vector<1x8x1xf32> to vector<1xf32>
    %43 = vector.shape_cast %42 : vector<1xf32> to vector<1x1x1xf32>
    %44 = vector.extract %43[0, 0, 0] : f32 from vector<1x1x1xf32>
    %45 = arith.addf %40, %44 : f32
    %c0_15 = arith.constant 0 : index
    %46 = memref.load %arg4[%c0_15] : memref<1xf32, #tpu.memory_space<smem>>
    memref.store %45, %arg4[%c0_15] : memref<1xf32, #tpu.memory_space<smem>>
    %c0_i32_16 = arith.constant 0 : i32
    %47 = arith.cmpi eq, %arg0, %c0_i32_16 : i32
    %48 = arith.extui %47 : i1 to i32
    %c0_i32_17 = arith.constant 0 : i32
    %49 = arith.cmpi ne, %48, %c0_i32_17 : i32
    scf.if %49 {
      %c0_18 = arith.constant 0 : index
      %50 = memref.load %arg4[%c0_18] : memref<1xf32, #tpu.memory_space<smem>>
      %cst_19 = arith.constant 1.250000e-01 : f32
      %51 = arith.mulf %50, %cst_19 : f32
      %c0_20 = arith.constant 0 : index
      %c0_21 = arith.constant 0 : index
      %52 = memref.load %arg3[%c0_20, %c0_21] : memref<1x1xf32, #tpu.memory_space<smem>>
      memref.store %51, %arg3[%c0_20, %c0_21] : memref<1x1xf32, #tpu.memory_space<smem>>
    } else {
    }
    return
  }
  func.func @transform_0(%arg0: i32) -> (i32, i32) {
    %c0_i32 = arith.constant 0 : i32
    %c0_i32_0 = arith.constant 0 : i32
    return %arg0, %c0_i32 : i32, i32
  }
  func.func @transform_1(%arg0: i32) -> (i32, i32) {
    %c0_i32 = arith.constant 0 : i32
    %c0_i32_0 = arith.constant 0 : i32
    return %arg0, %c0_i32 : i32, i32
  }
  func.func @transform_2(%arg0: i32) -> (i32, i32) {
    %c0_i32 = arith.constant 0 : i32
    %c0_i32_0 = arith.constant 0 : i32
    %c0_i32_1 = arith.constant 0 : i32
    return %c0_i32, %c0_i32_0 : i32, i32
  }
}

</mosaic_0001>

<bundles_post_ra>
// kernel: tpu_custom_call.1
= control target key start
LH: loop header
LB: loop body
LE: loop exit
PB: predicated region body
PF: predicated region fallthrough
CT: control target
= control target key end

     0   :  { %s145_s0 = inlined_call_operand.vmem [shape: f32[8,128], index: 0, kind: input, shape index: {}]   ;;  %s146_s1 = inlined_call_operand.vmem [shape: s32[8,1], index: 1, kind: input, shape index: {}]   ;;  %s147_s2 = inlined_call_operand.hbm [shape: f32[1,1], index: 2, kind: output, shape index: {}]  }
   0x1   :  { %v18_v0 = vld [vmem:[%s145_s0] sm:$0xff] }
   0x2   :  { %7 = vsyncpa [#allocation4], 0  ;;  %19 = vmax.xlane.f32.xlu0 %v18_v0  ;;  %v110_v1 = vmov 0   ;;  %v33_v2 = vld [vmem:[%s146_s1] sm:$0xff]  ;;  %v31_v6 = vlaneseq  ;;  %vm55_vm1 = vcmask 7168   ;;  %s98_s15 = scalar_lea.hbm %s147_s2, 16 }
   0x3   :  { %93 = vset.pattern.permute.xlu0 %v110_v1  ;;  %p99_p0 = scmp.ne.s32.totalorder %s147_s2, %s98_s15  ;;  %p102_p1 = scmp.lt.u32.totalorder %s98_s15, %s147_s2 }
   0x4   :  { %v32_v7 = vand.u32 127, %v31_v6 }
   0x5   :  { %p104_p2 = pnand %p102_p1, %p99_p0 }
  0x18   :  { %35 = vperm.xlu0 %93, %v33_v2  }
  0x8f   :  { %v20_v3 = vpop.xlane.xlu0 %19 }
  0x90   :  { %v21_v4 = vsub.f32 %v18_v0, %v20_v3 }
  0x92   :  { %v22_v5 = vmul.f32 1.442695, %v21_v4 }
  0x94   :  { %94 = vpow2.f32 %v22_v5 }
  0x97   :  { %v36_v9 = vpop.permute.xlu0 %35 }
  0x98   :  { %vm37_vm0 = vcmp.eq.s32.totalorder %v32_v7, %v36_v9 }
  0x99   :  { %v38_v10 = vsel %vm37_vm0, %v18_v0, 0.0 }
  0x9e   :  { %v95_v8 = vpop.eup %94 }
  0x9f   :  { %24 = vadd.xlane.f32.xlu1 %v95_v8 }
  0xa3   :  { %29 = vadd.xlane.f32.xlu1 %v18_v0 }
  0xa7   :  { %39 = vadd.xlane.f32.xlu1 %v38_v10 }
 0x12c   :  { %v25_v11 = vpop.xlane.xlu1 %24 }
 0x12d   :  { %96 = vlog2.f32 %v25_v11 }
 0x130   :  { %v30_v12 = vpop.xlane.xlu1 %29 }
 0x131   :  { %v42_v17 = vmul.f32 0.0078125, %v30_v12 }
 0x134   :  { %v40_v15 = vpop.xlane.xlu1 %39 }
 0x137   :  { %v97_v13 = vpop.eup %96 }
 0x138   :  { %v27_v14 = vmul.f32 0.6931472, %v97_v13 }
 0x13a   :  { %v28_v16 = vadd.f32 %v27_v14, %v20_v3 }
 0x13c   :  { %v43_v18 = vsub.f32 %v28_v16, %v42_v17  ;;  %v41_v19 = vsub.f32 %v28_v16, %v40_v15 }
 0x13e   :  { %v45_v20 = vmul.f32 0.1, %v43_v18  ;;  %v44_v21 = vmul.f32 0.9, %v41_v19 }
 0x140   :  { %v46_v22 = vadd.f32 %v45_v20, %v44_v21 }
 0x142   :  { %v56_v23 = vsel %vm55_vm1, %v46_v22, 0.0 }
 0x143   :  { %57 = vadd.xlane.f32.xlu1 %v56_v23 }
 0x1d0   :  { %v58_v24 = vpop.xlane.xlu1 %57 }
 0x1d1   :  { %v59_v25 = vrot.slane %v58_v24, 4 }
 0x1d3   :  { %v60_v26 = vadd.f32 %v59_v25, %v58_v24 }
 0x1d5   :  { %v61_v27 = vrot.slane %v60_v26, 2 }
 0x1d7   :  { %v62_v28 = vadd.f32 %v61_v27, %v60_v26 }
 0x1d9   :  { %v63_v29 = vrot.slane %v62_v28, 1 }
 0x1db   :  { %v64_v30 = vadd.f32 %v63_v29, %v62_v28 }
 0x1dd   :  { %89 = vpush %v64_v30 }
 0x20e   :  { %s90_s0 = spop %89 }
 0x20f   :  { %s73_s1 = smul.f32 0.125, %s90_s0 }
 0x211   :  { %75 = sst [smem:[#allocation3]] %s73_s1 }
 0x212   :  { %107 = shalt.err (!%p104_p2)
}
 0x213   :  { %s111_s20 = smov [#allocation3]  }
 0x214   :  { %83 = dma.smem_to_hbm %s111_s20, 16, %s147_s2, [#allocation4]  }
 0x215   :  { %108 = dma.done.wait [#allocation4], 16  }
 0x216   :  { %109 = vsyncadd [#allocation4], 4294967280 }
 0x217   :  { %87 = sfence }
 0x218   :  { %88 = vsyncpa [#allocation4], 1 }

</bundles_post_ra>
